<compile_context>
chip_gen: v5e
topology: v5e:2x2
jax: 0.10.0
libtpu: 0.0.40
codegen_flags: <defaults>
</compile_context>

<pallas_src>
import numpy as np
import jax
import jax.numpy as jnp
from jax.experimental import pallas as pl
from jax.experimental.pallas import tpu as pltpu

H0, W0 = 8, 8                    # input spatial
H1, W1 = 4, 4                    # conv1 output spatial
H2, W2 = 2, 2                    # conv2 output spatial
C_IN, C1, C2 = 3, 16, 64
FC1, FC2 = 100, 2
K_IN = C_IN * H0 * W0            # 192  (flattened NCHW input)
N1 = H1 * W1 * C1                # 256  (conv1 activation, (pos, c) order)
N2 = H2 * W2 * C2                # 256  (conv2 activation, (pos, c) order)
FC1_PAD = 128                    # fc1 output padded to 128 lanes
FC2_PAD = 128                    # fc2 output padded to 128 lanes (sliced to 2)


# ---------------------------------------------------------------------------
# Single fused Pallas kernel: the whole forward pass as 4 MXU matmuls.
# ---------------------------------------------------------------------------
def fused_forward_kernel(x_ref, w1_ref, s1_ref, w2_ref, s2_ref,
                         wf1_ref, bf1_ref, wf2_ref, bf2_ref, o_ref):
    """All intermediates stay in vregs/VMEM.

    x_ref  : (TB, 192)  flattened NCHW input tile
    w1_ref : (192, 256) conv1 as dense matrix, BN scale folded in
    s1_ref : (1, 256)   conv1 folded BN shift (tiled per position)
    w2_ref : (256, 256) conv2 as dense matrix, BN scale folded in
    s2_ref : (1, 256)   conv2 folded BN shift (tiled per position)
    wf1_ref: (256, 128) fc1 weight, columns permuted to (pos, c) order,
                        output zero-padded 100 -> 128
    bf1_ref: (1, 128)   fc1 bias, zero-padded
    wf2_ref: (128, 128) fc2 weight, zero-padded both ways
    bf2_ref: (1, 128)   fc2 bias, zero-padded
    o_ref  : (TB, 128)  lane-dense output (first 2 columns are the result)
    """
    h = jnp.dot(x_ref[...], w1_ref[...], preferred_element_type=jnp.float32)
    h = jnp.maximum(h + s1_ref[...], 0.0)                      # conv1+BN+ReLU
    h = jnp.dot(h, w2_ref[...], preferred_element_type=jnp.float32)
    h = jnp.maximum(h + s2_ref[...], 0.0)                      # conv2+BN+ReLU
    h = jnp.dot(h, wf1_ref[...], preferred_element_type=jnp.float32) \
        + bf1_ref[...]                                         # fc1
    # TODO(synk): training-mode dropout (Bernoulli 0.5, 2x scale) not implemented.
    o_ref[...] = jnp.dot(h, wf2_ref[...],
                         preferred_element_type=jnp.float32) + bf2_ref[...]


def _fused_call(xf, pp):
    B = xf.shape[0]
    TB = B if B <= 512 else 512                       # batch tile
    grid = (pl.cdiv(B, TB),)
    weight_keys = ("w1", "s1", "w2", "s2", "wf1", "bf1", "wf2", "bf2")
    weights = [pp[k] for k in weight_keys]
    in_specs = [pl.BlockSpec((TB, K_IN), lambda i: (i, 0))]
    in_specs += [pl.BlockSpec(w.shape, lambda i: (0, 0)) for w in weights]
    return pl.pallas_call(
        fused_forward_kernel,
        out_shape=jax.ShapeDtypeStruct((B, FC2_PAD), jnp.float32),
        grid=grid,
        in_specs=in_specs,
        out_specs=pl.BlockSpec((TB, FC2_PAD), lambda i: (i, 0)),
        compiler_params=pltpu.CompilerParams(
            dimension_semantics=("parallel",)),
    )(xf, *weights)


@jax.jit
def mymodel_forward(x, prepped):
    B = x.shape[0]
    xf = x.reshape(B, K_IN).astype(jnp.float32)       # NCHW flatten (c, h, w)
    out_pad = _fused_call(xf, prepped)                # (B, 128)
    return out_pad[:, :FC2]                           # (B, 2)


# ---------------------------------------------------------------------------
# Parameters: deterministic construction + one-time layout / BN-fold prep
# ---------------------------------------------------------------------------
def init_params():
    key = jax.random.PRNGKey(42)
    ks = jax.random.split(key, 8)
    p = {}
    p["w1"] = 0.1 * jax.random.normal(ks[0], (C1, C_IN, 3, 3), jnp.float32)
    p["b1"] = 0.05 * jax.random.normal(ks[1], (C1,), jnp.float32)
    p["g1"] = 1.0 + 0.01 * jnp.arange(C1, dtype=jnp.float32)
    p["be1"] = 0.01 * jnp.arange(C1, dtype=jnp.float32)
    p["m1"] = 0.02 * jnp.arange(C1, dtype=jnp.float32)
    p["v1"] = 1.0 + 0.03 * jnp.arange(C1, dtype=jnp.float32)
    p["w2"] = 0.1 * jax.random.normal(ks[2], (C2, C1, 3, 3), jnp.float32)
    p["b2"] = 0.05 * jax.random.normal(ks[3], (C2,), jnp.float32)
    p["g2"] = 1.0 + 0.005 * jnp.arange(C2, dtype=jnp.float32)
    p["be2"] = 0.005 * jnp.arange(C2, dtype=jnp.float32)
    p["m2"] = 0.01 * jnp.arange(C2, dtype=jnp.float32)
    p["v2"] = 1.0 + 0.02 * jnp.arange(C2, dtype=jnp.float32)
    p["fw1"] = 0.05 * jax.random.normal(ks[4], (FC1, H2 * W2 * C2), jnp.float32)
    p["fb1"] = 0.01 * jax.random.normal(ks[5], (FC1,), jnp.float32)
    p["fw2"] = 0.05 * jax.random.normal(ks[6], (FC2, FC1), jnp.float32)
    p["fb2"] = 0.01 * jax.random.normal(ks[7], (FC2,), jnp.float32)
    return p


def prepare_params(p, eps=1e-5):
    """One-time prep (host side): fold BN into the convs, express each conv
    (3x3, stride 2, pad 1) over its fixed spatial extent as a dense matrix,
    permute fc1 columns to the kernel's (pos, channel) activation order, and
    zero-pad fc1/fc2 outputs to 128 lanes."""
    w1 = np.asarray(p["w1"]); b1 = np.asarray(p["b1"])
    g1 = np.asarray(p["g1"]); be1 = np.asarray(p["be1"])
    m1 = np.asarray(p["m1"]); v1 = np.asarray(p["v1"])
    w2 = np.asarray(p["w2"]); b2 = np.asarray(p["b2"])
    g2 = np.asarray(p["g2"]); be2 = np.asarray(p["be2"])
    m2 = np.asarray(p["m2"]); v2 = np.asarray(p["v2"])
    fw1 = np.asarray(p["fw1"]); fb1 = np.asarray(p["fb1"])
    fw2 = np.asarray(p["fw2"]); fb2 = np.asarray(p["fb2"])

    scale1 = g1 / np.sqrt(v1 + eps)
    shift1 = be1 + scale1 * (b1 - m1)
    scale2 = g2 / np.sqrt(v2 + eps)
    shift2 = be2 + scale2 * (b2 - m2)

    # conv1 as a dense (192, 256) matrix: rows = NCHW input flatten,
    # cols = (oh1*W1 + ow1)*C1 + c1.  Zero-padded taps are simply zero rows.
    Wc1 = np.zeros((K_IN, N1), np.float32)
    for c1 in range(C1):
        for c in range(C_IN):
            for oh in range(H1):
                for ow in range(W1):
                    for kh in range(3):
                        ih = 2 * oh + kh - 1
                        if ih < 0 or ih >= H0:
                            continue
                        for kw in range(3):
                            iw = 2 * ow + kw - 1
                            if iw < 0 or iw >= W0:
                                continue
                            Wc1[c * H0 * W0 + ih * W0 + iw,
                                (oh * W1 + ow) * C1 + c1] = \
                                w1[c1, c, kh, kw] * scale1[c1]
    S1 = np.tile(shift1, H1 * W1).reshape(1, N1).astype(np.float32)

    # conv2 as a dense (256, 256) matrix on the (pos1, c1)-ordered activation.
    Wc2 = np.zeros((N1, N2), np.float32)
    for c2 in range(C2):
        for c1 in range(C1):
            for oh in range(H2):
                for ow in range(W2):
                    for kh in range(3):
                        ih = 2 * oh + kh - 1
                        if ih < 0 or ih >= H1:
                            continue
                        for kw in range(3):
                            iw = 2 * ow + kw - 1
                            if iw < 0 or iw >= W1:
                                continue
                            Wc2[(ih * W1 + iw) * C1 + c1,
                                (oh * W2 + ow) * C2 + c2] = \
                                w2[c2, c1, kh, kw] * scale2[c2]
    S2 = np.tile(shift2, H2 * W2).reshape(1, N2).astype(np.float32)

    # fc1: permute columns from PyTorch CHW-flatten (c2, oh2, ow2) to our
    # (pos2, c2) order; zero-pad the 100 outputs up to 128 lanes.
    perm = np.zeros((N2,), np.int64)
    for pos in range(H2 * W2):
        for c2 in range(C2):
            perm[pos * C2 + c2] = c2 * (H2 * W2) + pos
    Wf1 = np.zeros((N2, FC1_PAD), np.float32)
    Wf1[:, :FC1] = fw1[:, perm].T
    Bf1 = np.zeros((1, FC1_PAD), np.float32)
    Bf1[0, :FC1] = fb1

    # fc2: zero-padded (128, 128); padded fc1 lanes carry zero weight.
    Wf2 = np.zeros((FC1_PAD, FC2_PAD), np.float32)
    Wf2[:FC1, :FC2] = fw2.T
    Bf2 = np.zeros((1, FC2_PAD), np.float32)
    Bf2[0, :FC2] = fb2

    return {"w1": jnp.asarray(Wc1), "s1": jnp.asarray(S1),
            "w2": jnp.asarray(Wc2), "s2": jnp.asarray(S2),
            "wf1": jnp.asarray(Wf1), "bf1": jnp.asarray(Bf1),
            "wf2": jnp.asarray(Wf2), "bf2": jnp.asarray(Bf2)}


# ---------------------------------------------------------------------------
# Pure-JAX reference (for self-check)
# ---------------------------------------------------------------------------
@jax.jit
def reference_forward(x, p):
    eps = 1e-5

    def conv_bn_relu(x, w, b, g, be, m, v):
        y = jax.lax.conv_general_dilated(
            x, w, window_strides=(2, 2), padding=((1, 1), (1, 1)),
            dimension_numbers=("NCHW", "OIHW", "NCHW"))
        y = y + b[None, :, None, None]
        inv = g / jnp.sqrt(v + eps)
        y = inv[None, :, None, None] * (y - m[None, :, None, None]) \
            + be[None, :, None, None]
        return jnp.maximum(y, 0.0)

    x = conv_bn_relu(x, p["w1"], p["b1"], p["g1"], p["be1"], p["m1"], p["v1"])
    x = conv_bn_relu(x, p["w2"], p["b2"], p["g2"], p["be2"], p["m2"], p["v2"])
    x = x.reshape(x.shape[0], -1)
    x = x @ p["fw1"].T + p["fb1"]
    x = x @ p["fw2"].T + p["fb2"]           # dropout eval-mode identity
    return x


if __name__ == "__main__":
    params = init_params()
    prepped = prepare_params(params)
    x = jax.random.normal(jax.random.PRNGKey(0), (2, 3, 8, 8), jnp.float32)

    out = mymodel_forward(x, prepped)
    jax.block_until_ready(out)
    assert out.shape == (2, 2) and out.dtype == jnp.float32

    ref = reference_forward(x, params)
    assert bool(jnp.allclose(out, ref, rtol=1e-2, atol=1e-2)), (out, ref)

    print("KERNEL_OK")
</pallas_src>

<mosaic_0001>
module attributes {stable_mosaic.version = 11 : i64} {
  func.func @fused_forward_kernel(%arg0: i32, %arg1: memref<2x192xf32, #tpu.memory_space<vmem>>, %arg2: memref<192x256xf32, #tpu.memory_space<vmem>>, %arg3: memref<1x256xf32, #tpu.memory_space<vmem>>, %arg4: memref<256x256xf32, #tpu.memory_space<vmem>>, %arg5: memref<1x256xf32, #tpu.memory_space<vmem>>, %arg6: memref<256x128xf32, #tpu.memory_space<vmem>>, %arg7: memref<1x128xf32, #tpu.memory_space<vmem>>, %arg8: memref<128x128xf32, #tpu.memory_space<vmem>>, %arg9: memref<1x128xf32, #tpu.memory_space<vmem>>, %arg10: memref<2x128xf32, #tpu.memory_space<vmem>>) attributes {dimension_semantics = [#tpu.dimension_semantics<parallel>], iteration_bounds = array<i64: 1>, scalar_prefetch = 0 : i64, scratch_operands = 0 : i64, tpu.core_type = #tpu.core_type<tc>, window_params = [{transform_indices = @transform_0, window_bounds = array<i64: 2, 192>}, {pipeline_mode = #tpu.pipeline_mode<synchronous>, transform_indices = @transform_1, window_bounds = array<i64: 192, 256>}, {pipeline_mode = #tpu.pipeline_mode<synchronous>, transform_indices = @transform_2, window_bounds = array<i64: 1, 256>}, {pipeline_mode = #tpu.pipeline_mode<synchronous>, transform_indices = @transform_3, window_bounds = array<i64: 256, 256>}, {pipeline_mode = #tpu.pipeline_mode<synchronous>, transform_indices = @transform_4, window_bounds = array<i64: 1, 256>}, {pipeline_mode = #tpu.pipeline_mode<synchronous>, transform_indices = @transform_5, window_bounds = array<i64: 256, 128>}, {pipeline_mode = #tpu.pipeline_mode<synchronous>, transform_indices = @transform_6, window_bounds = array<i64: 1, 128>}, {pipeline_mode = #tpu.pipeline_mode<synchronous>, transform_indices = @transform_7, window_bounds = array<i64: 128, 128>}, {pipeline_mode = #tpu.pipeline_mode<synchronous>, transform_indices = @transform_8, window_bounds = array<i64: 1, 128>}, {transform_indices = @transform_9, window_bounds = array<i64: 2, 128>}]} {
    %c0 = arith.constant 0 : index
    %c0_0 = arith.constant 0 : index
    %0 = vector.load %arg1[%c0, %c0_0] : memref<2x192xf32, #tpu.memory_space<vmem>>, vector<2x192xf32>
    %c0_1 = arith.constant 0 : index
    %c0_2 = arith.constant 0 : index
    %1 = vector.load %arg2[%c0_1, %c0_2] : memref<192x256xf32, #tpu.memory_space<vmem>>, vector<192x256xf32>
    %cst = arith.constant dense<0.000000e+00> : vector<2x256xf32>
    %2 = tpu.matmul %0, %1, %cst {dimension_numbers = #tpu.dot_dimension_numbers<[1], [0], [0], [1], [0, 0, 1, 1], [], []>} : vector<2x192xf32>, vector<192x256xf32>, vector<2x256xf32> -> vector<2x256xf32>
    %c0_3 = arith.constant 0 : index
    %c0_4 = arith.constant 0 : index
    %3 = vector.load %arg3[%c0_3, %c0_4] : memref<1x256xf32, #tpu.memory_space<vmem>>, vector<1x256xf32>
    %4 = vector.broadcast %3 : vector<1x256xf32> to vector<2x256xf32>
    %5 = arith.addf %2, %4 : vector<2x256xf32>
    %cst_5 = arith.constant 0.000000e+00 : f32
    %6 = vector.broadcast %cst_5 : f32 to vector<2x256xf32>
    %7 = arith.maximumf %5, %6 : vector<2x256xf32>
    %c0_6 = arith.constant 0 : index
    %c0_7 = arith.constant 0 : index
    %8 = vector.load %arg4[%c0_6, %c0_7] : memref<256x256xf32, #tpu.memory_space<vmem>>, vector<256x256xf32>
    %cst_8 = arith.constant dense<0.000000e+00> : vector<2x256xf32>
    %9 = tpu.matmul %7, %8, %cst_8 {dimension_numbers = #tpu.dot_dimension_numbers<[1], [0], [0], [1], [0, 0, 1, 1], [], []>} : vector<2x256xf32>, vector<256x256xf32>, vector<2x256xf32> -> vector<2x256xf32>
    %c0_9 = arith.constant 0 : index
    %c0_10 = arith.constant 0 : index
    %10 = vector.load %arg5[%c0_9, %c0_10] : memref<1x256xf32, #tpu.memory_space<vmem>>, vector<1x256xf32>
    %11 = vector.broadcast %10 : vector<1x256xf32> to vector<2x256xf32>
    %12 = arith.addf %9, %11 : vector<2x256xf32>
    %cst_11 = arith.constant 0.000000e+00 : f32
    %13 = vector.broadcast %cst_11 : f32 to vector<2x256xf32>
    %14 = arith.maximumf %12, %13 : vector<2x256xf32>
    %c0_12 = arith.constant 0 : index
    %c0_13 = arith.constant 0 : index
    %15 = vector.load %arg6[%c0_12, %c0_13] : memref<256x128xf32, #tpu.memory_space<vmem>>, vector<256x128xf32>
    %cst_14 = arith.constant dense<0.000000e+00> : vector<2x128xf32>
    %16 = tpu.matmul %14, %15, %cst_14 {dimension_numbers = #tpu.dot_dimension_numbers<[1], [0], [0], [1], [0, 0, 1, 1], [], []>} : vector<2x256xf32>, vector<256x128xf32>, vector<2x128xf32> -> vector<2x128xf32>
    %c0_15 = arith.constant 0 : index
    %c0_16 = arith.constant 0 : index
    %17 = vector.load %arg7[%c0_15, %c0_16] : memref<1x128xf32, #tpu.memory_space<vmem>>, vector<1x128xf32>
    %18 = vector.broadcast %17 : vector<1x128xf32> to vector<2x128xf32>
    %19 = arith.addf %16, %18 : vector<2x128xf32>
    %c0_17 = arith.constant 0 : index
    %c0_18 = arith.constant 0 : index
    %20 = vector.load %arg8[%c0_17, %c0_18] : memref<128x128xf32, #tpu.memory_space<vmem>>, vector<128x128xf32>
    %cst_19 = arith.constant dense<0.000000e+00> : vector<2x128xf32>
    %21 = tpu.matmul %19, %20, %cst_19 {dimension_numbers = #tpu.dot_dimension_numbers<[1], [0], [0], [1], [0, 0, 1, 1], [], []>} : vector<2x128xf32>, vector<128x128xf32>, vector<2x128xf32> -> vector<2x128xf32>
    %c0_20 = arith.constant 0 : index
    %c0_21 = arith.constant 0 : index
    %22 = vector.load %arg9[%c0_20, %c0_21] : memref<1x128xf32, #tpu.memory_space<vmem>>, vector<1x128xf32>
    %23 = vector.broadcast %22 : vector<1x128xf32> to vector<2x128xf32>
    %24 = arith.addf %21, %23 : vector<2x128xf32>
    %c0_22 = arith.constant 0 : index
    %c0_23 = arith.constant 0 : index
    %25 = vector.load %arg10[%c0_22, %c0_23] : memref<2x128xf32, #tpu.memory_space<vmem>>, vector<2x128xf32>
    tpu.vector_store %arg10[%c0_22, %c0_23], %24 {strides = array<i32>} : memref<2x128xf32, #tpu.memory_space<vmem>>, vector<2x128xf32>,
    return
  }
  func.func @transform_0(%arg0: i32) -> (i32, i32) {
    %c0_i32 = arith.constant 0 : i32
    %c0_i32_0 = arith.constant 0 : i32
    return %arg0, %c0_i32 : i32, i32
  }
  func.func @transform_1(%arg0: i32) -> (i32, i32) {
    %c0_i32 = arith.constant 0 : i32
    %c0_i32_0 = arith.constant 0 : i32
    %c0_i32_1 = arith.constant 0 : i32
    return %c0_i32, %c0_i32_0 : i32, i32
  }
  func.func @transform_2(%arg0: i32) -> (i32, i32) {
    %c0_i32 = arith.constant 0 : i32
    %c0_i32_0 = arith.constant 0 : i32
    %c0_i32_1 = arith.constant 0 : i32
    return %c0_i32, %c0_i32_0 : i32, i32
  }
  func.func @transform_3(%arg0: i32) -> (i32, i32) {
    %c0_i32 = arith.constant 0 : i32
    %c0_i32_0 = arith.constant 0 : i32
    %c0_i32_1 = arith.constant 0 : i32
    return %c0_i32, %c0_i32_0 : i32, i32
  }
  func.func @transform_4(%arg0: i32) -> (i32, i32) {
    %c0_i32 = arith.constant 0 : i32
    %c0_i32_0 = arith.constant 0 : i32
    %c0_i32_1 = arith.constant 0 : i32
    return %c0_i32, %c0_i32_0 : i32, i32
  }
  func.func @transform_5(%arg0: i32) -> (i32, i32) {
    %c0_i32 = arith.constant 0 : i32
    %c0_i32_0 = arith.constant 0 : i32
    %c0_i32_1 = arith.constant 0 : i32
    return %c0_i32, %c0_i32_0 : i32, i32
  }
  func.func @transform_6(%arg0: i32) -> (i32, i32) {
    %c0_i32 = arith.constant 0 : i32
    %c0_i32_0 = arith.constant 0 : i32
    %c0_i32_1 = arith.constant 0 : i32
    return %c0_i32, %c0_i32_0 : i32, i32
  }
  func.func @transform_7(%arg0: i32) -> (i32, i32) {
    %c0_i32 = arith.constant 0 : i32
    %c0_i32_0 = arith.constant 0 : i32
    %c0_i32_1 = arith.constant 0 : i32
    return %c0_i32, %c0_i32_0 : i32, i32
  }
  func.func @transform_8(%arg0: i32) -> (i32, i32) {
    %c0_i32 = arith.constant 0 : i32
    %c0_i32_0 = arith.constant 0 : i32
    %c0_i32_1 = arith.constant 0 : i32
    return %c0_i32, %c0_i32_0 : i32, i32
  }
  func.func @transform_9(%arg0: i32) -> (i32, i32) {
    %c0_i32 = arith.constant 0 : i32
    %c0_i32_0 = arith.constant 0 : i32
    return %arg0, %c0_i32 : i32, i32
  }
}

</mosaic_0001>

<bundles_post_ra>
// kernel: mymodel_forward.1
= control target key start
LH: loop header
LB: loop body
LE: loop exit
PB: predicated region body
PF: predicated region fallthrough
CT: control target
= control target key end

     0   :  { %14 = vsyncpa [#allocation3], 0  ;;  %s761_s0 = inlined_call_operand.vmem [shape: f32[2,192], index: 0, kind: input, shape index: {}]   ;;  %s762_s1 = inlined_call_operand.hbm [shape: f32[192,256], index: 1, kind: input, shape index: {}]   ;;  %s763_s2 = inlined_call_operand.vmem [shape: f32[1,256], index: 2, kind: input, shape index: {}]   ;;  %s764_s3 = inlined_call_operand.hbm [shape: f32[256,256], index: 3, kind: input, shape index: {}]   ;;  %s765_s4 = inlined_call_operand.vmem [shape: f32[1,256], index: 4, kind: input, shape index: {}]   ;;  %s766_s5 = inlined_call_operand.hbm [shape: f32[256,128], index: 5, kind: input, shape index: {}]   ;;  %s767_s6 = inlined_call_operand.vmem [shape: f32[1,128], index: 6, kind: input, shape index: {}]   ;;  %s768_s7 = inlined_call_operand.hbm [shape: f32[128,128], index: 7, kind: input, shape index: {}]   ;;  %s769_s8 = inlined_call_operand.vmem [shape: f32[1,128], index: 8, kind: input, shape index: {}]   ;;  %s770_s9 = inlined_call_operand.hbm [shape: f32[2,128], index: 9, kind: output, shape index: {}]  }
   0x1   :  { %15 = vsyncpa [#allocation6], 0 }
   0x2   :  { %16 = vsyncpa [#allocation9], 0 }
   0x3   :  { %17 = vsyncpa [#allocation4], 0  ;;  %s39_s11 = sshll.u32 %s764_s3, 4  ;;  %s670_s12 = smov [#allocation5]   ;;  %s40_s11 = int_to_ptr.hbm [resolvable:$true] %s39_s11 }
   0x4   :  { %s41_s13 = sshll.u32 %s670_s12, 4  ;;  %s24_s16 = sshll.u32 %s762_s1, 4  ;;  %s42_s13 = int_to_ptr.vmem [resolvable:$true] %s41_s13  ;;  %s25_s16 = int_to_ptr.hbm [resolvable:$true] %s24_s16 }
   0x5   :  { %s671_s17 = smov 256   ;;  %s672_s18 = smov 16  }
   0x6   :  { %47 = dma.hbm_to_vmem [thread:$0]  %s40_s11, 8192, %s42_s13, [#allocation6], %s671_s17, %s671_s17, %s672_s18  }
   0x7   :  { %s673_s19 = smov [#allocation2]   ;;  %s54_s23 = sshll.u32 %s766_s5, 4  ;;  %s55_s23 = int_to_ptr.hbm [resolvable:$true] %s54_s23 }
   0x8   :  { %s26_s20 = sshll.u32 %s673_s19, 4  ;;  %s674_s3 = smov [#allocation7]   ;;  %s27_s20 = int_to_ptr.vmem [resolvable:$true] %s26_s20 }
   0x9   :  { %32 = dma.hbm_to_vmem [thread:$0]  %s25_s16, 6144, %s27_s20, [#allocation3], %s671_s17, %s671_s17, %s672_s18  }
   0xa   :  { %s56_s24 = sshll.u32 %s674_s3, 4  ;;  %s69_s1 = sshll.u32 %s768_s7, 4  ;;  %s57_s24 = int_to_ptr.vmem [resolvable:$true] %s56_s24  ;;  %s70_s1 = int_to_ptr.hbm [resolvable:$true] %s69_s1 }
   0xb   :  { %s675_s27 = smov 128   ;;  %s676_s28 = smov 8  }
   0xc   :  { %62 = dma.hbm_to_vmem [thread:$0]  %s55_s23, 4096, %s57_s24, [#allocation6], %s675_s27, %s675_s27, %s676_s28  }
   0xd   :  { %s677_s29 = smov [#allocation8]  }
   0xe   :  { %s71_s30 = sshll.u32 %s677_s29, 4  ;;  %s72_s30 = int_to_ptr.vmem [resolvable:$true] %s71_s30 }
   0xf   :  { %77 = dma.hbm_to_vmem [thread:$0]  %s70_s1, 2048, %s72_s30, [#allocation9], %s675_s27, %s675_s27, %s676_s28  }
  0x10   :  { %662 = dma.done.wait [#allocation3], 6144  }
  0x11   :  { %663 = vsyncadd [#allocation3], 4294961152 }
  0x12   :  { %664 = dma.done.wait [#allocation6], 12288  }
  0x13   :  { %665 = vsyncadd [#allocation6], 4294955008 }
  0x14   :  { %666 = dma.done.wait [#allocation9], 2048  }
  0x15   :  { %667 = vsyncadd [#allocation9], 4294965248  ;;  %v128_v0 = vld [vmem:[#allocation2 + $0xf8] sm:$0xff]  ;;  %v126_v1 = vld [vmem:[#allocation2 + $0xe8] sm:$0xff]  ;;  %vm156_vm0 = vcmask 523264   ;;  %s678_s15 = smov [#allocation10]  }
  0x16   :  { %199 = vmatpush.msra.mxu2 %v128_v0  ;;  %v127_v2 = vld [vmem:[#allocation2 + $0xf0] sm:$0xff]  ;;  %v124_v3 = vld [vmem:[#allocation2 + $0xd8] sm:$0xff]  ;;  %v125_v4 = vld [vmem:[#allocation2 + $0xe0] sm:$0xff]  ;;  %s515_s16 = sshll.u32 %s678_s15, 4  ;;  %s517_s19 = sshll.u32 %s770_s9, 4  ;;  %s516_s16 = int_to_ptr.vmem [resolvable:$true] %s515_s16  ;;  %s518_s19 = int_to_ptr.hbm [resolvable:$true] %s517_s19 }
  0x17   :  { %159 = vmatpush.msra.mxu0 %v127_v2  ;;  %v123_v5 = vld [vmem:[#allocation2 + $0xd0] sm:$0xff]  ;;  %v122_v6 = vld [vmem:[#allocation2 + $0xc8] sm:$0xff]  ;;  %v121_v7 = vld [vmem:[#allocation2 + $0xc0] sm:$0xff] }
  0x18   :  { %200 = vmatpush.msra.mxu2 %v126_v1  ;;  %v144_v8 = vld [vmem:[#allocation2 + $0x178] sm:$0xff]  ;;  %v142_v10 = vld [vmem:[#allocation2 + $0x168] sm:$0xff]  ;;  %v119_v11 = vld [vmem:[#allocation2 + $0xb0] sm:$0xff] }
  0x19   :  { %160 = vmatpush.msra.mxu0 %v125_v4  ;;  %v120_v9 = vld [vmem:[#allocation2 + $0xb8] sm:$0xff]  ;;  %227 = vmatpush.msra.mxu3 %v144_v8  ;;  %v118_v13 = vld [vmem:[#allocation2 + $0xa8] sm:$0xff]  ;;  %v117_v14 = vld [vmem:[#allocation2 + $0xa0] sm:$0xff] }
  0x1a   :  { %201 = vmatpush.msra.mxu2 %v124_v3  ;;  %v140_v12 = vld [vmem:[#allocation2 + $0x158] sm:$0xff]  ;;  %v138_v15 = vld [vmem:[#allocation2 + $0x148] sm:$0xff]  ;;  %v143_v16 = vld [vmem:[#allocation2 + $0x170] sm:$0xff] }
  0x1b   :  { %161 = vmatpush.msra.mxu0 %v123_v5  ;;  %228 = vmatpush.msra.mxu3 %v142_v10  ;;  %v116_v17 = vld [vmem:[#allocation2 + $0x98] sm:$0xff]  ;;  %v115_v18 = vld [vmem:[#allocation2 + $0x90] sm:$0xff]  ;;  %v141_v20 = vld [vmem:[#allocation2 + $0x160] sm:$0xff] }
  0x1c   :  { %202 = vmatpush.msra.mxu2 %v122_v6  ;;  %v136_v19 = vld [vmem:[#allocation2 + $0x138] sm:$0xff]  ;;  %187 = vmatpush.msra.mxu1 %v143_v16  ;;  %v114_v21 = vld [vmem:[#allocation2 + $0x88] sm:$0xff]  ;;  %v139_v23 = vld [vmem:[#allocation2 + $0x150] sm:$0xff] }
  0x1d   :  { %162 = vmatpush.msra.mxu0 %v121_v7  ;;  %229 = vmatpush.msra.mxu3 %v140_v12  ;;  %v96_v22 = vld [vmem:[%s761_s0] sm:$0xf]  ;;  %v113_v24 = vld [vmem:[#allocation2 + $0x80] sm:$0xff]  ;;  %v134_v25 = vld [vmem:[#allocation2 + $0x128] sm:$0xff] }
  0x1e   :  { %203 = vmatpush.msra.mxu2 %v120_v9  ;;  %188 = vmatpush.msra.mxu1 %v141_v20  ;;  %152 = vst [vmem:[#allocation1] ss:$4 sm:$0xff] %v96_v22  ;;  %v112_v26 = vld [vmem:[#allocation2 + $0x78] sm:$0xff]  ;;  %v137_v27 = vld [vmem:[#allocation2 + $0x140] sm:$0xff]  ;;  %v111_v28 = vld [vmem:[#allocation2 + $0x70] sm:$0xff] }
  0x1f   :  { %163 = vmatpush.msra.mxu0 %v119_v11  ;;  %230 = vmatpush.msra.mxu3 %v138_v15  ;;  %v132_v29 = vld [vmem:[#allocation2 + $0x118] sm:$0xff]  ;;  %v110_v30 = vld [vmem:[#allocation2 + $0x68] sm:$0xff]  ;;  %v135_v31 = vld [vmem:[#allocation2 + $0x130] sm:$0xff] }
  0x20   :  { %204 = vmatpush.msra.mxu2 %v118_v13  ;;  %189 = vmatpush.msra.mxu1 %v139_v23  ;;  %v109_v32 = vld [vmem:[#allocation2 + $0x60] sm:$0xff]  ;;  %v130_v33 = vld [vmem:[#allocation2 + $0x108] sm:$0xff]  ;;  %v108_v34 = vld [vmem:[#allocation2 + $0x58] sm:$0xff] }
  0x21   :  { %164 = vmatpush.msra.mxu0 %v117_v14  ;;  %231 = vmatpush.msra.mxu3 %v136_v19  ;;  %v107_v35 = vld [vmem:[#allocation2 + $0x50] sm:$0xff]  ;;  %v133_v36 = vld [vmem:[#allocation2 + $0x120] sm:$0xff]  ;;  %v106_v37 = vld [vmem:[#allocation2 + $0x48] sm:$0xff] }
  0x22   :  { %205 = vmatpush.msra.mxu2 %v116_v17  ;;  %190 = vmatpush.msra.mxu1 %v137_v27  ;;  %v303_v39 = vld [vmem:[#allocation5 + $0x1f0] sm:$0xff]  ;;  %v105_v40 = vld [vmem:[#allocation2 + $0x40] sm:$0xff]  ;;  %v104_v42 = vld [vmem:[#allocation2 + $0x38] sm:$0xff] }
  0x23   :  { %165 = vmatpush.msra.mxu0 %v115_v18  ;;  %232 = vmatpush.msra.mxu3 %v134_v25  ;;  %v131_v41 = vld [vmem:[#allocation2 + $0x110] sm:$0xff]  ;;  %v301_v43 = vld [vmem:[#allocation5 + $0x1e0] sm:$0xff]  ;;  %v102_v46 = vld [vmem:[#allocation2 + $0x28] sm:$0xff] }
  0x24   :  { %206 = vmatpush.msra.mxu2 %v114_v21  ;;  %191 = vmatpush.msra.mxu1 %v135_v31  ;;  %v103_v44 = vld [vmem:[#allocation2 + $0x30] sm:$0xff]  ;;  %v129_v45 = vld [vmem:[#allocation2 + $0x100] sm:$0xff]  ;;  %v100_v49 = vld [vmem:[#allocation2 + $0x18] sm:$0xff] }
  0x25   :  { %166 = vmatpush.msra.mxu0 %v113_v24  ;;  %233 = vmatpush.msra.mxu3 %v132_v29  ;;  %v154_v38 = vld.sshfl [vmem:[#allocation1 + $0x8] sm:$0xff pattern:$0x73625140]  ;;  %v271_v48 = vld [vmem:[#allocation5 + $0xf0] sm:$0xff]  ;;  %v98_v53 = vld [vmem:[#allocation2 + $0x8] sm:$0xff] }
  0x26   :  { %207 = vmatpush.msra.mxu2 %v112_v26  ;;  %192 = vmatpush.msra.mxu1 %v133_v36  ;;  %v101_v47 = vld [vmem:[#allocation2 + $0x20] sm:$0xff]  ;;  %v299_v50 = vld [vmem:[#allocation5 + $0x1d0] sm:$0xff]  ;;  %v153_v55 = vld.sshfl [vmem:[#allocation1] sm:$0xff pattern:$0x73625140] }
  0x27   :  { %167 = vmatpush.msra.mxu0 %v111_v28  ;;  %234 = vmatpush.msra.mxu3 %v130_v33  ;;  %v99_v51 = vld [vmem:[#allocation2 + $0x10] sm:$0xff]  ;;  %v269_v52 = vld [vmem:[#allocation5 + $0xe0] sm:$0xff]  ;;  %v304_v57 = vld [vmem:[#allocation5 + $0x1f8] sm:$0xff] }
  0x28   :  { %208 = vmatpush.msra.mxu2 %v110_v30  ;;  %530 = vmatmul.msk.f32.vlgmr.msra.gmra.mxu3 %vm156_vm0, %v154_v38  ;;  %v297_v54 = vld [vmem:[#allocation5 + $0x1c0] sm:$0xff]  ;;  %v302_v58 = vld [vmem:[#allocation5 + $0x1e8] sm:$0xff]  ;;  %v272_v59 = vld [vmem:[#allocation5 + $0xf8] sm:$0xff] }
  0x29   :  { %168 = vmatpush.msra.mxu0 %v109_v32  ;;  %331 = vmatpush.msrb.mxu3 %v303_v39  ;;  %v97_v56 = vld [vmem:[#allocation2] sm:$0xff]  ;;  %v267_v60 = vld [vmem:[#allocation5 + $0xd0] sm:$0xff]  ;;  %v270_v62 = vld [vmem:[#allocation5 + $0xe8] sm:$0xff] }
  0x2a   :  { %209 = vmatpush.msra.mxu2 %v108_v34  ;;  %193 = vmatpush.msra.mxu1 %v131_v41  ;;  %v295_v61 = vld [vmem:[#allocation5 + $0x1b0] sm:$0xff]  ;;  %v265_v63 = vld [vmem:[#allocation5 + $0xc0] sm:$0xff]  ;;  %v300_v0 = vld [vmem:[#allocation5 + $0x1d8] sm:$0xff] }
  0x2b   :  { %169 = vmatpush.msra.mxu0 %v107_v35  ;;  %332 = vmatpush.msrb.mxu3 %v301_v43  ;;  %v293_v1 = vld [vmem:[#allocation5 + $0x1a0] sm:$0xff]  ;;  %v268_v2 = vld [vmem:[#allocation5 + $0xd8] sm:$0xff]  ;;  %v263_v3 = vld [vmem:[#allocation5 + $0xb0] sm:$0xff] }
  0x2c   :  { %210 = vmatpush.msra.mxu2 %v106_v37  ;;  %194 = vmatpush.msra.mxu1 %v129_v45  ;;  %v298_v4 = vld [vmem:[#allocation5 + $0x1c8] sm:$0xff]  ;;  %v291_v5 = vld [vmem:[#allocation5 + $0x190] sm:$0xff]  ;;  %v261_v7 = vld [vmem:[#allocation5 + $0xa0] sm:$0xff] }
  0x2d   :  { %170 = vmatpush.msra.mxu0 %v105_v40  ;;  %529 = vmatmul.msk.f32.vlgmr.msra.gmra.mxu1 %vm156_vm0, %v154_v38  ;;  %v266_v6 = vld [vmem:[#allocation5 + $0xc8] sm:$0xff]  ;;  %v296_v8 = vld [vmem:[#allocation5 + $0x1b8] sm:$0xff]  ;;  %v289_v9 = vld [vmem:[#allocation5 + $0x180] sm:$0xff] }
  0x2e   :  { %211 = vmatpush.msra.mxu2 %v104_v42  ;;  %311 = vmatpush.msrb.mxu1 %v271_v48  ;;  %v264_v10 = vld [vmem:[#allocation5 + $0xb8] sm:$0xff]  ;;  %v259_v11 = vld [vmem:[#allocation5 + $0x90] sm:$0xff]  ;;  %v294_v12 = vld [vmem:[#allocation5 + $0x1a8] sm:$0xff] }
  0x2f   :  { %171 = vmatpush.msra.mxu0 %v103_v44  ;;  %333 = vmatpush.msrb.mxu3 %v299_v50  ;;  %v287_v13 = vld [vmem:[#allocation5 + $0x170] sm:$0xff]  ;;  %v262_v14 = vld [vmem:[#allocation5 + $0xa8] sm:$0xff]  ;;  %v257_v15 = vld [vmem:[#allocation5 + $0x80] sm:$0xff] }
  0x30   :  { %212 = vmatpush.msra.mxu2 %v102_v46  ;;  %312 = vmatpush.msrb.mxu1 %v269_v52  ;;  %v292_v16 = vld [vmem:[#allocation5 + $0x198] sm:$0xff]  ;;  %v285_v17 = vld [vmem:[#allocation5 + $0x160] sm:$0xff]  ;;  %v255_v19 = vld [vmem:[#allocation5 + $0x70] sm:$0xff] }
  0x31   :  { %172 = vmatpush.msra.mxu0 %v101_v47  ;;  %334 = vmatpush.msrb.mxu3 %v297_v54  ;;  %v260_v18 = vld [vmem:[#allocation5 + $0x98] sm:$0xff]  ;;  %v290_v20 = vld [vmem:[#allocation5 + $0x188] sm:$0xff]  ;;  %v283_v21 = vld [vmem:[#allocation5 + $0x150] sm:$0xff] }
  0x32   :  { %213 = vmatpush.msra.mxu2 %v100_v49  ;;  %313 = vmatpush.msrb.mxu1 %v267_v60  ;;  %v258_v22 = vld [vmem:[#allocation5 + $0x88] sm:$0xff]  ;;  %v253_v23 = vld [vmem:[#allocation5 + $0x60] sm:$0xff]  ;;  %v288_v24 = vld [vmem:[#allocation5 + $0x178] sm:$0xff] }
  0x33   :  { %173 = vmatpush.msra.mxu0 %v99_v51  ;;  %335 = vmatpush.msrb.mxu3 %v295_v61  ;;  %v281_v25 = vld [vmem:[#allocation5 + $0x140] sm:$0xff]  ;;  %v256_v26 = vld [vmem:[#allocation5 + $0x78] sm:$0xff]  ;;  %v286_v27 = vld [vmem:[#allocation5 + $0x168] sm:$0xff] }
  0x34   :  { %214 = vmatpush.msra.mxu2 %v98_v53  ;;  %314 = vmatpush.msrb.mxu1 %v265_v63  ;;  %v254_v28 = vld [vmem:[#allocation5 + $0x68] sm:$0xff]  ;;  %v284_v29 = vld [vmem:[#allocation5 + $0x158] sm:$0xff]  ;;  %v251_v31 = vld [vmem:[#allocation5 + $0x50] sm:$0xff] }
  0x35   :  { %215 = vmatmul.f32.vlgmr.msra.gmra.mxu2 %v153_v55  ;;  %174 = vmatpush.msra.mxu0 %v97_v56  ;;  %v282_v30 = vld [vmem:[#allocation5 + $0x148] sm:$0xff]  ;;  %v279_v32 = vld [vmem:[#allocation5 + $0x130] sm:$0xff]  ;;  %v252_v33 = vld [vmem:[#allocation5 + $0x58] sm:$0xff] }
  0x36   :  { %175 = vmatmul.f32.vlgmr.msra.gmra.mxu0 %v153_v55  ;;  %371 = vmatpush.msrb.mxu2 %v304_v57  ;;  %v280_v34 = vld [vmem:[#allocation5 + $0x138] sm:$0xff]  ;;  %v249_v35 = vld [vmem:[#allocation5 + $0x40] sm:$0xff]  ;;  %v250_v37 = vld [vmem:[#allocation5 + $0x48] sm:$0xff] }
  0x37   :  { %351 = vmatpush.msrb.mxu0 %v272_v59  ;;  %336 = vmatpush.msrb.mxu3 %v293_v1  ;;  %v277_v36 = vld [vmem:[#allocation5 + $0x120] sm:$0xff]  ;;  %v278_v38 = vld [vmem:[#allocation5 + $0x128] sm:$0xff]  ;;  %v247_v39 = vld [vmem:[#allocation5 + $0x30] sm:$0xff] }
  0x38   :  { %372 = vmatpush.msrb.mxu2 %v302_v58  ;;  %315 = vmatpush.msrb.mxu1 %v263_v3  ;;  %v275_v40 = vld [vmem:[#allocation5 + $0x110] sm:$0xff]  ;;  %v248_v41 = vld [vmem:[#allocation5 + $0x38] sm:$0xff]  ;;  %v245_v43 = vld [vmem:[#allocation5 + $0x20] sm:$0xff] }
  0x39   :  { %352 = vmatpush.msrb.mxu0 %v270_v62  ;;  %337 = vmatpush.msrb.mxu3 %v291_v5  ;;  %v276_v42 = vld [vmem:[#allocation5 + $0x118] sm:$0xff]  ;;  %v273_v44 = vld [vmem:[#allocation5 + $0x100] sm:$0xff]  ;;  %v246_v45 = vld [vmem:[#allocation5 + $0x28] sm:$0xff] }
  0x3a   :  { %373 = vmatpush.msrb.mxu2 %v300_v0  ;;  %316 = vmatpush.msrb.mxu1 %v261_v7  ;;  %v274_v46 = vld [vmem:[#allocation5 + $0x108] sm:$0xff]  ;;  %v243_v47 = vld [vmem:[#allocation5 + $0x10] sm:$0xff]  ;;  %v244_v48 = vld [vmem:[#allocation5 + $0x18] sm:$0xff] }
  0x3b   :  { %353 = vmatpush.msrb.mxu0 %v268_v2  ;;  %338 = vmatpush.msrb.mxu3 %v289_v9  ;;  %v241_v49 = vld [vmem:[#allocation5] sm:$0xff]  ;;  %v242_v50 = vld [vmem:[#allocation5 + $0x8] sm:$0xff]  ;;  %v408_v51 = vld [vmem:[#allocation7 + $0x78] sm:$0xff] }
  0x3c   :  { %374 = vmatpush.msrb.mxu2 %v298_v4  ;;  %317 = vmatpush.msrb.mxu1 %v259_v11  ;;  %v424_v52 = vld [vmem:[#allocation7 + $0xf8] sm:$0xff]  ;;  %v423_v53 = vld [vmem:[#allocation7 + $0xf0] sm:$0xff]  ;;  %v422_v55 = vld [vmem:[#allocation7 + $0xe8] sm:$0xff] }
  0x3d   :  { %354 = vmatpush.msrb.mxu0 %v266_v6  ;;  %339 = vmatpush.msrb.mxu3 %v287_v13  ;;  %v407_v54 = vld [vmem:[#allocation7 + $0x70] sm:$0xff]  ;;  %v406_v56 = vld [vmem:[#allocation7 + $0x68] sm:$0xff]  ;;  %v421_v57 = vld [vmem:[#allocation7 + $0xe0] sm:$0xff] }
  0x3e   :  { %375 = vmatpush.msrb.mxu2 %v296_v8  ;;  %318 = vmatpush.msrb.mxu1 %v257_v15  ;;  %v405_v58 = vld [vmem:[#allocation7 + $0x60] sm:$0xff]  ;;  %v420_v59 = vld [vmem:[#allocation7 + $0xd8] sm:$0xff]  ;;  %v419_v61 = vld [vmem:[#allocation7 + $0xd0] sm:$0xff] }
  0x3f   :  { %355 = vmatpush.msrb.mxu0 %v264_v10  ;;  %340 = vmatpush.msrb.mxu3 %v285_v17  ;;  %v404_v60 = vld [vmem:[#allocation7 + $0x58] sm:$0xff]  ;;  %v403_v62 = vld [vmem:[#allocation7 + $0x50] sm:$0xff]  ;;  %v418_v63 = vld [vmem:[#allocation7 + $0xc8] sm:$0xff] }
  0x40   :  { %376 = vmatpush.msrb.mxu2 %v294_v12  ;;  %319 = vmatpush.msrb.mxu1 %v255_v19  ;;  %v402_v0 = vld [vmem:[#allocation7 + $0x48] sm:$0xff]  ;;  %v417_v1 = vld [vmem:[#allocation7 + $0xc0] sm:$0xff]  ;;  %v145_v3 = vld [vmem:[%s763_s2] sm:$0x3] }
  0x41   :  { %356 = vmatpush.msrb.mxu0 %v262_v14  ;;  %341 = vmatpush.msrb.mxu3 %v283_v21  ;;  %v401_v2 = vld [vmem:[#allocation7 + $0x40] sm:$0xff]  ;;  %v416_v4 = vld [vmem:[#allocation7 + $0xb8] sm:$0xff]  ;;  %v147_v5 = vperm.slane %v145_v3, 0  ;;  %v415_v7 = vld [vmem:[#allocation7 + $0xb0] sm:$0xff]  ;;  %v148_v14 = vperm.slane %v145_v3, 1 }
  0x42   :  { %377 = vmatpush.msrb.mxu2 %v292_v16  ;;  %320 = vmatpush.msrb.mxu1 %v253_v23  ;;  %v400_v6 = vld [vmem:[#allocation7 + $0x38] sm:$0xff]  ;;  %v399_v8 = vld [vmem:[#allocation7 + $0x30] sm:$0xff]  ;;  %v414_v11 = vld [vmem:[#allocation7 + $0xa8] sm:$0xff] }
  0x43   :  { %357 = vmatpush.msrb.mxu0 %v260_v18  ;;  %342 = vmatpush.msrb.mxu3 %v281_v25  ;;  %v398_v13 = vld [vmem:[#allocation7 + $0x28] sm:$0xff]  ;;  %v413_v15 = vld [vmem:[#allocation7 + $0xa0] sm:$0xff]  ;;  %v412_v25 = vld [vmem:[#allocation7 + $0x98] sm:$0xff] }
  0x44   :  { %378 = vmatpush.msrb.mxu2 %v290_v20  ;;  %321 = vmatpush.msrb.mxu1 %v251_v31  ;;  %v397_v17 = vld [vmem:[#allocation7 + $0x20] sm:$0xff] }
  0x45   :  { %358 = vmatpush.msrb.mxu0 %v258_v22  ;;  %343 = vmatpush.msrb.mxu3 %v279_v32  ;;  %v409_v31 = vld [vmem:[#allocation7 + $0x80] sm:$0xff]  ;;  %v484_v32 = vld [vmem:[#allocation8 + $0x78] sm:$0xff] }
  0x46   :  { %379 = vmatpush.msrb.mxu2 %v288_v24  ;;  %322 = vmatpush.msrb.mxu1 %v249_v35  ;;  %v396_v24 = vld [vmem:[#allocation7 + $0x18] sm:$0xff]  ;;  %v481_v35 = vld [vmem:[#allocation8 + $0x60] sm:$0xff] }
  0x47   :  { %359 = vmatpush.msrb.mxu0 %v256_v26  ;;  %344 = vmatpush.msrb.mxu3 %v277_v36  ;;  %v395_v26 = vld [vmem:[#allocation7 + $0x10] sm:$0xff]  ;;  %v480_v36 = vld [vmem:[#allocation8 + $0x58] sm:$0xff] }
  0x48   :  { %380 = vmatpush.msrb.mxu2 %v286_v27  ;;  %323 = vmatpush.msrb.mxu1 %v247_v39  ;;  %v411_v27 = vld [vmem:[#allocation7 + $0x90] sm:$0xff]  ;;  %v477_v39 = vld [vmem:[#allocation8 + $0x40] sm:$0xff] }
  0x49   :  { %360 = vmatpush.msrb.mxu0 %v254_v28  ;;  %345 = vmatpush.msrb.mxu3 %v275_v40  ;;  %v394_v28 = vld [vmem:[#allocation7 + $0x8] sm:$0xff]  ;;  %v476_v40 = vld [vmem:[#allocation8 + $0x38] sm:$0xff] }
  0x4a   :  { %381 = vmatpush.msrb.mxu2 %v284_v29  ;;  %324 = vmatpush.msrb.mxu1 %v245_v43  ;;  %v410_v29 = vld [vmem:[#allocation7 + $0x88] sm:$0xff] }
  0x4b   :  { %361 = vmatpush.msrb.mxu0 %v252_v33  ;;  %346 = vmatpush.msrb.mxu3 %v273_v44  ;;  %v483_v33 = vld [vmem:[#allocation8 + $0x70] sm:$0xff]  ;;  %v474_v43 = vld [vmem:[#allocation8 + $0x28] sm:$0xff] }
  0x4c   :  { %382 = vmatpush.msrb.mxu2 %v282_v30  ;;  %325 = vmatpush.msrb.mxu1 %v243_v47  ;;  %v393_v30 = vld [vmem:[#allocation7] sm:$0xff] }
  0x4d   :  { %362 = vmatpush.msrb.mxu0 %v250_v37  ;;  %449 = vmatpush.msra.mxu3 %v424_v52  ;;  %v479_v37 = vld [vmem:[#allocation8 + $0x50] sm:$0xff] }
  0x4e   :  { %383 = vmatpush.msrb.mxu2 %v280_v34  ;;  %326 = vmatpush.msrb.mxu1 %v241_v49  ;;  %v482_v34 = vld [vmem:[#allocation8 + $0x68] sm:$0xff] }
  0x4f   :  { %363 = vmatpush.msrb.mxu0 %v248_v41  ;;  %450 = vmatpush.msra.mxu3 %v423_v53  ;;  %v475_v41 = vld [vmem:[#allocation8 + $0x30] sm:$0xff] }
  0x50   :  { %384 = vmatpush.msrb.mxu2 %v278_v38  ;;  %429 = vmatpush.msra.mxu1 %v408_v51  ;;  %v478_v38 = vld [vmem:[#allocation8 + $0x48] sm:$0xff] }
  0x51   :  { %364 = vmatpush.msrb.mxu0 %v246_v45  ;;  %451 = vmatpush.msra.mxu3 %v422_v55 }
  0x52   :  { %385 = vmatpush.msrb.mxu2 %v276_v42  ;;  %430 = vmatpush.msra.mxu1 %v407_v54  ;;  %v305_v42 = vld [vmem:[%s765_s4] sm:$0x3] }
  0x53   :  { %365 = vmatpush.msrb.mxu0 %v244_v48  ;;  %452 = vmatpush.msra.mxu3 %v421_v57  ;;  %v307_v44 = vperm.slane %v305_v42, 0  ;;  %v308_v45 = vperm.slane %v305_v42, 1  ;;  %v472_v57 = vld [vmem:[#allocation8 + $0x18] sm:$0xff] }
  0x54   :  { %386 = vmatpush.msrb.mxu2 %v274_v46  ;;  %431 = vmatpush.msra.mxu1 %v406_v56  ;;  %v473_v56 = vld [vmem:[#allocation8 + $0x20] sm:$0xff] }
  0x55   :  { %366 = vmatpush.msrb.mxu0 %v242_v50  ;;  %453 = vmatpush.msra.mxu3 %v420_v59  ;;  %v470_v59 = vld [vmem:[#allocation8 + $0x8] sm:$0xff] }
  0x56   :  { %432 = vmatpush.msra.mxu1 %v405_v58  ;;  %v471_v58 = vld [vmem:[#allocation8 + $0x10] sm:$0xff] }
  0x57   :  { %454 = vmatpush.msra.mxu3 %v419_v61  ;;  %489 = vmatpush.msra.mxu0 %v484_v32  ;;  %v540_v61 = vld [vmem:[%s767_s6] ss:$0 sm:$0xff] }
  0x58   :  { %433 = vmatpush.msra.mxu1 %v404_v60  ;;  %v469_v60 = vld [vmem:[#allocation8] sm:$0xff] }
  0x59   :  { %455 = vmatpush.msra.mxu3 %v418_v63  ;;  %490 = vmatpush.msra.mxu0 %v483_v33 }
  0x5a   :  { %434 = vmatpush.msra.mxu1 %v403_v62 }
  0x5b   :  { %456 = vmatpush.msra.mxu3 %v417_v1  ;;  %491 = vmatpush.msra.mxu0 %v482_v34 }
  0x5c   :  { %435 = vmatpush.msra.mxu1 %v402_v0 }
  0x5d   :  { %457 = vmatpush.msra.mxu3 %v416_v4  ;;  %492 = vmatpush.msra.mxu0 %v481_v35 }
  0x5e   :  { %436 = vmatpush.msra.mxu1 %v401_v2  ;;  %v541_v2 = vld [vmem:[%s769_s8] ss:$0 sm:$0xff] }
  0x5f   :  { %458 = vmatpush.msra.mxu3 %v415_v7  ;;  %493 = vmatpush.msra.mxu0 %v480_v36 }
  0x60   :  { %437 = vmatpush.msra.mxu1 %v400_v6 }
  0x61   :  { %459 = vmatpush.msra.mxu3 %v414_v11  ;;  %494 = vmatpush.msra.mxu0 %v479_v37 }
  0x62   :  { %438 = vmatpush.msra.mxu1 %v399_v8 }
  0x63   :  { %460 = vmatpush.msra.mxu3 %v413_v15  ;;  %495 = vmatpush.msra.mxu0 %v478_v38 }
  0x64   :  { %439 = vmatpush.msra.mxu1 %v398_v13 }
  0x65   :  { %461 = vmatpush.msra.mxu3 %v412_v25  ;;  %496 = vmatpush.msra.mxu0 %v477_v39 }
  0x66   :  { %440 = vmatpush.msra.mxu1 %v397_v17 }
  0x67   :  { %462 = vmatpush.msra.mxu3 %v411_v27  ;;  %497 = vmatpush.msra.mxu0 %v476_v40 }
  0x68   :  { %441 = vmatpush.msra.mxu1 %v396_v24 }
  0x69   :  { %463 = vmatpush.msra.mxu3 %v410_v29  ;;  %498 = vmatpush.msra.mxu0 %v475_v41 }
  0x6a   :  { %442 = vmatpush.msra.mxu1 %v395_v26 }
  0x6b   :  { %464 = vmatpush.msra.mxu3 %v409_v31  ;;  %499 = vmatpush.msra.mxu0 %v474_v43 }
  0x6c   :  { %443 = vmatpush.msra.mxu1 %v394_v28 }
  0x6d   :  { %500 = vmatpush.msra.mxu0 %v473_v56 }
  0x6e   :  { %444 = vmatpush.msra.mxu1 %v393_v30 }
  0x6f   :  { %501 = vmatpush.msra.mxu0 %v472_v57 }
  0x71   :  { %502 = vmatpush.msra.mxu0 %v471_v58 }
  0x73   :  { %503 = vmatpush.msra.mxu0 %v470_v59 }
  0x75   :  { %504 = vmatpush.msra.mxu0 %v469_v60 }
  0xaa   :  { %v196_v10 = vpop.f32.mrf.mxu1 }
  0xab   :  { %v236_v19 = vpop.f32.mrf.mxu3 }
  0xb3   :  { %v176_v9 = vpop.f32.mrf.mxu0 }
  0xb4   :  { %v177_v12 = vadd.f32 %v176_v9, %v147_v5 }
  0xb6   :  { %v197_v16 = vadd.f32 %v196_v10, %v177_v12 }
  0xb8   :  { %v216_v18 = vpop.f32.mrf.mxu2  ;;  %v239_v20 = vmax.f32 %v197_v16, 0.0 }
  0xb9   :  { %v217_v21 = vadd.f32 %v216_v18, %v148_v14 }
  0xba   :  { %327 = vmatmul.f32.vlgmr.msrb.gmra.mxu1 %v239_v20  ;;  %367 = vmatmul.f32.vlgmr.msrb.gmra.mxu0 %v239_v20 }
  0xbb   :  { %v237_v22 = vadd.f32 %v236_v19, %v217_v21 }
  0xbd   :  { %v240_v23 = vmax.f32 %v237_v22, 0.0 }
  0xbf   :  { %347 = vmatmul.f32.vlgmr.msrb.gmra.mxu3 %v240_v23  ;;  %387 = vmatmul.f32.vlgmr.msrb.gmra.mxu2 %v240_v23 }
 0x137   :  { %v328_v46 = vpop.f32.mrf.mxu1  ;;  %v368_v47 = vpop.f32.mrf.mxu0 }
 0x138   :  { %v329_v48 = vadd.f32 %v328_v46, %v307_v44  ;;  %v369_v49 = vadd.f32 %v368_v47, %v308_v45 }
 0x142   :  { %v348_v50 = vpop.f32.mrf.mxu3  ;;  %v388_v51 = vpop.f32.mrf.mxu2 }
 0x143   :  { %v349_v52 = vadd.f32 %v348_v50, %v329_v48  ;;  %v389_v53 = vadd.f32 %v388_v51, %v369_v49 }
 0x145   :  { %v391_v54 = vmax.f32 %v349_v52, 0.0  ;;  %v392_v55 = vmax.f32 %v389_v53, 0.0 }
 0x147   :  { %445 = vmatmul.f32.vlgmr.msra.gmra.mxu1 %v391_v54  ;;  %465 = vmatmul.f32.vlgmr.msra.gmra.mxu3 %v392_v55 }
 0x1c4   :  { %v446_v62 = vpop.f32.mrf.mxu1 }
 0x1c5   :  { %v447_v63 = vadd.f32 %v540_v61, %v446_v62 }
 0x1ca   :  { %v466_v0 = vpop.f32.mrf.mxu3 }
 0x1cb   :  { %v467_v1 = vadd.f32 %v466_v0, %v447_v63 }
 0x1cd   :  { %505 = vmatmul.f32.vlgmr.msra.gmra.mxu0 %v467_v1 }
 0x24a   :  { %v506_v3 = vpop.f32.mrf.mxu0 }
 0x24b   :  { %v507_v4 = vadd.f32 %v541_v2, %v506_v3 }
 0x24d   :  { %509 = vst [vmem:[#allocation10] sm:$0x3] %v507_v4 }
 0x24e   :  { %520 = dma.vmem_to_hbm [thread:$0]  %s516_s16, 32, %s518_s19, [#allocation4]  }
 0x24f   :  { %668 = dma.done.wait [#allocation4], 32  }
 0x250   :  { %669 = vsyncadd [#allocation4], 4294967264 }
 0x251   :  { %525 = vsyncpa [#allocation3], 1 }
 0x252   :  { %526 = vsyncpa [#allocation6], 1 }
 0x253   :  { %527 = vsyncpa [#allocation9], 1 }
 0x254   :  { %528 = vsyncpa [#allocation4], 1 }

</bundles_post_ra>
